<compile_context>
chip_gen: v7x
topology: tpu7x:2x2x1
jax: 0.10.0
libtpu: 0.0.40
codegen_flags: <defaults>
</compile_context>

<pallas_src>
import functools

import jax
import jax.numpy as jnp
from jax import lax
from jax.experimental import pallas as pl
from jax.experimental.pallas import tpu as pltpu

NEG_SLOPE = 0.01   # nn.LeakyReLU default
TAU = 0.2          # CLTopicModule.tau
EPS = 1e-12        # F.normalize eps
MASK_NEG = -1e30   # finite "minus infinity" for padded logits


def _round_up(x, m):
    return (x + m - 1) // m * m


def _leaky(x):
    return jnp.where(x >= 0, x, NEG_SLOPE * x)


def cl_topic_kernel(g_ref,
                    wte_ref, bte_ref,
                    wp1_ref, bp1_ref,
                    wp2_ref, bp2_ref,
                    wfc_ref, bfc_ref,
                    out_ref, emb_ref, loss_ref,
                    *, n_valid, n_pad):
    mxu_dtype = g_ref.dtype  # bf16 feed (or f32 if caller chose so)

    # ---- topic_encoder (MLP) on both views at once (views stacked along rows) ----
    # dropout(p=0) is identity.
    h = _leaky(jnp.dot(g_ref[...], wte_ref[...],
                       preferred_element_type=jnp.float32) + bte_ref[...])   # [2*Np, Hp] f32

    # ---- projection head: Linear -> ReLU -> Linear, still stacked ----
    a = jnp.maximum(
        jnp.dot(h.astype(mxu_dtype), wp1_ref[...],
                preferred_element_type=jnp.float32) + bp1_ref[...], 0.0)
    z = jnp.dot(a.astype(mxu_dtype), wp2_ref[...],
                preferred_element_type=jnp.float32) + bp2_ref[...]           # [2*Np, Hp]

    # Row-wise L2 normalization via rsqrt (EUP), eps folded as eps^2 on the sum of squares.
    inv = lax.rsqrt(jnp.maximum(jnp.sum(z * z, axis=-1, keepdims=True), EPS * EPS))
    zn = z * inv

    z1n = zn[:n_pad]       # static, 8-aligned row slices
    z2n = zn[n_pad:]

    inv_tau = jnp.float32(1.0 / TAU)

    # Positive logit per row (diagonal of the similarity matrix) computed on the VPU.
    d = jnp.sum(z1n * z2n, axis=-1, keepdims=True) * inv_tau                 # [Np, 1]

    # Full similarity matrix without transposing z2n: contract last dims of both operands.
    sims = lax.dot_general(
        z1n.astype(mxu_dtype), z2n.astype(mxu_dtype),
        dimension_numbers=(((1,), (1,)), ((), ())),
        preferred_element_type=jnp.float32) * inv_tau                        # [Np, Np]

    # Mask out padded rows / columns and take a stable logsumexp over valid columns.
    row_ids = lax.broadcasted_iota(jnp.int32, (n_pad, n_pad), 0)
    col_ids = lax.broadcasted_iota(jnp.int32, (n_pad, n_pad), 1)
    valid = (row_ids < n_valid) & (col_ids < n_valid)
    logits = jnp.where(valid, sims, jnp.float32(MASK_NEG))

    m = jnp.max(logits, axis=-1, keepdims=True)
    lse = m + jnp.log(jnp.sum(jnp.exp(logits - m), axis=-1, keepdims=True))  # [Np, 1]
    row_loss = lse - d                                                       # -log(pos/ttl)

    row_valid = lax.broadcasted_iota(jnp.int32, (n_pad, 1), 0) < n_valid
    loss = jnp.sum(jnp.where(row_valid, row_loss, 0.0), axis=0, keepdims=True) \
        * jnp.float32(1.0 / n_valid)                                         # [1, 1]

    # topic embeddings and fc_out head (VPU reduction instead of degenerate MXU matmul).
    h1 = h[:n_pad]
    h2 = h[n_pad:]
    emb = (h1 + h2) * 0.5
    emb_ref[...] = emb

    out_col = _leaky(jnp.sum(emb * wfc_ref[...], axis=-1, keepdims=True)
                     + bfc_ref[0, 0])                                        # [Np, 1]

    # Lane-dense writebacks (unmasked vst); wrapper slices.
    out_ref[...] = jnp.broadcast_to(out_col, out_ref.shape)
    loss_ref[...] = jnp.broadcast_to(loss, loss_ref.shape)


def cl_topic_forward(g1, g2, params, *, mxu_dtype=jnp.bfloat16):
    """Fused forward of CLTopicModule.

    Returns (out [N,1] f32, topic_embs [N,H] f32, cl_loss scalar f32).
    """
    N, H = g1.shape
    n_pad = _round_up(max(N, 8), 8)
    h_pad = _round_up(max(H, 128), 128)

    def pad2(x, rows, cols):
        return jnp.pad(x, ((0, rows - x.shape[0]), (0, cols - x.shape[1])))

    # Zero-pad once and stack the two views along rows (one MXU pass per layer).
    # Zero columns/rows in the weights keep the padded lanes exactly zero, so only the CL loss
    # needs in-kernel validity masking (done above).
    g1p = pad2(g1, n_pad, h_pad)
    g2p = pad2(g2, n_pad, h_pad)
    g_stacked = jnp.concatenate([g1p, g2p], axis=0).astype(mxu_dtype)        # [2*Np, Hp]

    w_te = pad2(params["w_te"], h_pad, h_pad).astype(mxu_dtype)
    b_te = pad2(params["b_te"], 1, h_pad)
    w_p1 = pad2(params["w_p1"], h_pad, h_pad).astype(mxu_dtype)
    b_p1 = pad2(params["b_p1"], 1, h_pad)
    w_p2 = pad2(params["w_p2"], h_pad, h_pad).astype(mxu_dtype)
    b_p2 = pad2(params["b_p2"], 1, h_pad)
    w_fc_row = pad2(params["w_fc"].T, 1, h_pad)   # [1, Hp], f32: used on the VPU
    b_fc = params["b_fc"].reshape(1, 1)           # [1, 1], f32 scalar -> SMEM

    inputs = (g_stacked, w_te, b_te, w_p1, b_p1, w_p2, b_p2, w_fc_row, b_fc)

    vmem = pl.BlockSpec(memory_space=pltpu.MemorySpace.VMEM)
    smem = pl.BlockSpec(memory_space=pltpu.MemorySpace.SMEM)
    kernel = functools.partial(cl_topic_kernel, n_valid=N, n_pad=n_pad)

    out_slab, emb_pad, loss_slab = pl.pallas_call(
        kernel,
        out_shape=(
            jax.ShapeDtypeStruct((n_pad, 128), jnp.float32),    # out (lane-broadcast)
            jax.ShapeDtypeStruct((n_pad, h_pad), jnp.float32),  # topic_embs (padded)
            jax.ShapeDtypeStruct((8, 128), jnp.float32),        # cl_loss (lane-broadcast)
        ),
        in_specs=[vmem] * (len(inputs) - 1) + [smem],
        out_specs=(vmem, vmem, vmem),
    )(*inputs)

    out = out_slab[:N, :1]
    topic_embs = emb_pad[:N, :H]
    cl_loss = loss_slab[0, 0]
    return out, topic_embs, cl_loss


def init_params(key, hidden_dim):
    """Deterministic PyTorch-style (uniform +/- 1/sqrt(fan_in)) init. Weights stored [in, out]."""
    ks = jax.random.split(key, 8)

    def lin(k_w, k_b, fan_in, fan_out):
        bound = 1.0 / jnp.sqrt(fan_in)
        w = jax.random.uniform(k_w, (fan_in, fan_out), jnp.float32, -bound, bound)
        b = jax.random.uniform(k_b, (1, fan_out), jnp.float32, -bound, bound)
        return w, b

    w_te, b_te = lin(ks[0], ks[1], hidden_dim, hidden_dim)   # topic_encoder MLP
    w_fc, b_fc = lin(ks[2], ks[3], hidden_dim, 1)            # fc_out MLP
    w_p1, b_p1 = lin(ks[4], ks[5], hidden_dim, hidden_dim)   # projection head layer 1
    w_p2, b_p2 = lin(ks[6], ks[7], hidden_dim, hidden_dim)   # projection head layer 2
    return dict(w_te=w_te, b_te=b_te, w_fc=w_fc, b_fc=b_fc,
                w_p1=w_p1, b_p1=b_p1, w_p2=w_p2, b_p2=b_p2)


if __name__ == "__main__":
    N, H = 8, 32  # N snapshot readouts, hidden_dim H
    key = jax.random.PRNGKey(0)
    k1, k2, kp = jax.random.split(key, 3)

    g1_snapshots = jax.random.normal(k1, (N, H), jnp.float32)
    g2_snapshots = jax.random.normal(k2, (N, H), jnp.float32)
    params = init_params(kp, H)

    out, topic_embs, cl_loss = cl_topic_forward(g1_snapshots, g2_snapshots, params)
    jax.block_until_ready((out, topic_embs, cl_loss))

    assert out.shape == (N, 1)
    assert topic_embs.shape == (N, H)
    assert cl_loss.shape == ()
    assert jnp.isfinite(out).all() and jnp.isfinite(topic_embs).all() and jnp.isfinite(cl_loss)
    print("KERNEL_OK")
</pallas_src>

<mosaic_0001>
module attributes {stable_mosaic.version = 11 : i64} {
  func.func @cl_topic_kernel(%arg0: memref<16x128xbf16, #tpu.memory_space<vmem>>, %arg1: memref<128x128xbf16, #tpu.memory_space<vmem>>, %arg2: memref<1x128xf32, #tpu.memory_space<vmem>>, %arg3: memref<128x128xbf16, #tpu.memory_space<vmem>>, %arg4: memref<1x128xf32, #tpu.memory_space<vmem>>, %arg5: memref<128x128xbf16, #tpu.memory_space<vmem>>, %arg6: memref<1x128xf32, #tpu.memory_space<vmem>>, %arg7: memref<1x128xf32, #tpu.memory_space<vmem>>, %arg8: memref<1x1xf32, #tpu.memory_space<smem>>, %arg9: memref<8x128xf32, #tpu.memory_space<vmem>>, %arg10: memref<8x128xf32, #tpu.memory_space<vmem>>, %arg11: memref<8x128xf32, #tpu.memory_space<vmem>>) attributes {dimension_semantics = [], scalar_prefetch = 0 : i64, scratch_operands = 0 : i64, tpu.core_type = #tpu.core_type<tc>} {
    %c0 = arith.constant 0 : index
    %c0_0 = arith.constant 0 : index
    %0 = vector.load %arg0[%c0, %c0_0] : memref<16x128xbf16, #tpu.memory_space<vmem>>, vector<16x128xbf16>
    %c0_1 = arith.constant 0 : index
    %c0_2 = arith.constant 0 : index
    %1 = vector.load %arg1[%c0_1, %c0_2] : memref<128x128xbf16, #tpu.memory_space<vmem>>, vector<128x128xbf16>
    %cst = arith.constant dense<0.000000e+00> : vector<16x128xf32>
    %2 = tpu.matmul %0, %1, %cst {dimension_numbers = #tpu.dot_dimension_numbers<[1], [0], [0], [1], [0, 0, 1, 1], [], []>} : vector<16x128xbf16>, vector<128x128xbf16>, vector<16x128xf32> -> vector<16x128xf32>
    %c0_3 = arith.constant 0 : index
    %c0_4 = arith.constant 0 : index
    %3 = vector.load %arg2[%c0_3, %c0_4] : memref<1x128xf32, #tpu.memory_space<vmem>>, vector<1x128xf32>
    %4 = vector.broadcast %3 : vector<1x128xf32> to vector<16x128xf32>
    %5 = arith.addf %2, %4 : vector<16x128xf32>
    %cst_5 = arith.constant 0.000000e+00 : f32
    %6 = vector.broadcast %cst_5 : f32 to vector<16x128xf32>
    %7 = arith.cmpf oge, %5, %6 : vector<16x128xf32>
    %cst_6 = arith.constant 0.00999999977 : f32
    %8 = vector.broadcast %cst_6 : f32 to vector<16x128xf32>
    %9 = arith.mulf %8, %5 : vector<16x128xf32>
    %10 = arith.select %7, %5, %9 : vector<16x128xi1>, vector<16x128xf32>
    %11 = arith.truncf %10 : vector<16x128xf32> to vector<16x128xbf16>
    %c0_7 = arith.constant 0 : index
    %c0_8 = arith.constant 0 : index
    %12 = vector.load %arg3[%c0_7, %c0_8] : memref<128x128xbf16, #tpu.memory_space<vmem>>, vector<128x128xbf16>
    %cst_9 = arith.constant dense<0.000000e+00> : vector<16x128xf32>
    %13 = tpu.matmul %11, %12, %cst_9 {dimension_numbers = #tpu.dot_dimension_numbers<[1], [0], [0], [1], [0, 0, 1, 1], [], []>} : vector<16x128xbf16>, vector<128x128xbf16>, vector<16x128xf32> -> vector<16x128xf32>
    %c0_10 = arith.constant 0 : index
    %c0_11 = arith.constant 0 : index
    %14 = vector.load %arg4[%c0_10, %c0_11] : memref<1x128xf32, #tpu.memory_space<vmem>>, vector<1x128xf32>
    %15 = vector.broadcast %14 : vector<1x128xf32> to vector<16x128xf32>
    %16 = arith.addf %13, %15 : vector<16x128xf32>
    %cst_12 = arith.constant 0.000000e+00 : f32
    %17 = vector.broadcast %cst_12 : f32 to vector<16x128xf32>
    %18 = arith.maximumf %16, %17 : vector<16x128xf32>
    %19 = arith.truncf %18 : vector<16x128xf32> to vector<16x128xbf16>
    %c0_13 = arith.constant 0 : index
    %c0_14 = arith.constant 0 : index
    %20 = vector.load %arg5[%c0_13, %c0_14] : memref<128x128xbf16, #tpu.memory_space<vmem>>, vector<128x128xbf16>
    %cst_15 = arith.constant dense<0.000000e+00> : vector<16x128xf32>
    %21 = tpu.matmul %19, %20, %cst_15 {dimension_numbers = #tpu.dot_dimension_numbers<[1], [0], [0], [1], [0, 0, 1, 1], [], []>} : vector<16x128xbf16>, vector<128x128xbf16>, vector<16x128xf32> -> vector<16x128xf32>
    %c0_16 = arith.constant 0 : index
    %c0_17 = arith.constant 0 : index
    %22 = vector.load %arg6[%c0_16, %c0_17] : memref<1x128xf32, #tpu.memory_space<vmem>>, vector<1x128xf32>
    %23 = vector.broadcast %22 : vector<1x128xf32> to vector<16x128xf32>
    %24 = arith.addf %21, %23 : vector<16x128xf32>
    %25 = arith.mulf %24, %24 : vector<16x128xf32>
    %cst_18 = arith.constant dense<0.000000e+00> : vector<16xf32>
    %26 = vector.multi_reduction <add>, %25, %cst_18 [1] : vector<16x128xf32> to vector<16xf32>
    %27 = vector.shape_cast %26 : vector<16xf32> to vector<16x1xf32>
    %cst_19 = arith.constant 1.000000e-24 : f32
    %28 = vector.broadcast %cst_19 : f32 to vector<16x1xf32>
    %29 = arith.maximumf %27, %28 : vector<16x1xf32>
    %30 = math.rsqrt %29 : vector<16x1xf32>
    %31 = vector.broadcast %30 : vector<16x1xf32> to vector<16x128xf32>
    %32 = arith.mulf %24, %31 : vector<16x128xf32>
    %33 = vector.extract_strided_slice %32 {offsets = [0, 0], sizes = [8, 128], strides = [1, 1]} : vector<16x128xf32> to vector<8x128xf32>
    %34 = vector.extract_strided_slice %32 {offsets = [8, 0], sizes = [8, 128], strides = [1, 1]} : vector<16x128xf32> to vector<8x128xf32>
    %35 = arith.mulf %33, %34 : vector<8x128xf32>
    %cst_20 = arith.constant dense<0.000000e+00> : vector<8xf32>
    %36 = vector.multi_reduction <add>, %35, %cst_20 [1] : vector<8x128xf32> to vector<8xf32>
    %37 = vector.shape_cast %36 : vector<8xf32> to vector<8x1xf32>
    %cst_21 = arith.constant 5.000000e+00 : f32
    %38 = vector.broadcast %cst_21 : f32 to vector<8x1xf32>
    %39 = arith.mulf %37, %38 : vector<8x1xf32>
    %40 = arith.truncf %33 : vector<8x128xf32> to vector<8x128xbf16>
    %41 = arith.truncf %34 : vector<8x128xf32> to vector<8x128xbf16>
    %cst_22 = arith.constant dense<0.000000e+00> : vector<8x8xf32>
    %42 = tpu.matmul %40, %41, %cst_22 {dimension_numbers = #tpu.dot_dimension_numbers<[1], [1], [0], [0], [0, 0, 1, 0], [], []>} : vector<8x128xbf16>, vector<8x128xbf16>, vector<8x8xf32> -> vector<8x8xf32>
    %cst_23 = arith.constant 5.000000e+00 : f32
    %43 = vector.broadcast %cst_23 : f32 to vector<8x8xf32>
    %44 = arith.mulf %42, %43 : vector<8x8xf32>
    %45 = tpu.iota {dimensions = array<i32: 0>} : vector<8x8xi32>
    %46 = tpu.iota {dimensions = array<i32: 1>} : vector<8x8xi32>
    %c8_i32 = arith.constant 8 : i32
    %47 = vector.broadcast %c8_i32 : i32 to vector<8x8xi32>
    %48 = arith.cmpi slt, %45, %47 : vector<8x8xi32>
    %c8_i32_24 = arith.constant 8 : i32
    %49 = vector.broadcast %c8_i32_24 : i32 to vector<8x8xi32>
    %50 = arith.cmpi slt, %46, %49 : vector<8x8xi32>
    %51 = arith.andi %48, %50 : vector<8x8xi1>
    %cst_25 = arith.constant -1.000000e+30 : f32
    %52 = vector.broadcast %cst_25 : f32 to vector<8x8xf32>
    %53 = arith.select %51, %44, %52 : vector<8x8xi1>, vector<8x8xf32>
    %cst_26 = arith.constant dense<0xFF800000> : vector<8xf32>
    %54 = vector.multi_reduction <maximumf>, %53, %cst_26 [1] : vector<8x8xf32> to vector<8xf32>
    %55 = vector.shape_cast %54 : vector<8xf32> to vector<8x1xf32>
    %56 = vector.broadcast %55 : vector<8x1xf32> to vector<8x8xf32>
    %57 = arith.subf %53, %56 : vector<8x8xf32>
    %58 = math.exp %57 : vector<8x8xf32>
    %cst_27 = arith.constant dense<0.000000e+00> : vector<8xf32>
    %59 = vector.multi_reduction <add>, %58, %cst_27 [1] : vector<8x8xf32> to vector<8xf32>
    %60 = vector.shape_cast %59 : vector<8xf32> to vector<8x1xf32>
    %61 = math.log %60 : vector<8x1xf32>
    %62 = arith.addf %55, %61 : vector<8x1xf32>
    %63 = arith.subf %62, %39 : vector<8x1xf32>
    %64 = tpu.iota {dimensions = array<i32: 0>} : vector<8x1xi32>
    %c8_i32_28 = arith.constant 8 : i32
    %65 = vector.broadcast %c8_i32_28 : i32 to vector<8x1xi32>
    %66 = arith.cmpi slt, %64, %65 : vector<8x1xi32>
    %cst_29 = arith.constant 0.000000e+00 : f32
    %67 = vector.broadcast %cst_29 : f32 to vector<8x1xf32>
    %68 = arith.select %66, %63, %67 : vector<8x1xi1>, vector<8x1xf32>
    %cst_30 = arith.constant dense<0.000000e+00> : vector<1xf32>
    %69 = vector.multi_reduction <add>, %68, %cst_30 [0] : vector<8x1xf32> to vector<1xf32>
    %70 = vector.shape_cast %69 : vector<1xf32> to vector<1x1xf32>
    %cst_31 = arith.constant 1.250000e-01 : f32
    %71 = vector.broadcast %cst_31 : f32 to vector<1x1xf32>
    %72 = arith.mulf %70, %71 : vector<1x1xf32>
    %73 = vector.extract_strided_slice %10 {offsets = [0, 0], sizes = [8, 128], strides = [1, 1]} : vector<16x128xf32> to vector<8x128xf32>
    %74 = vector.extract_strided_slice %10 {offsets = [8, 0], sizes = [8, 128], strides = [1, 1]} : vector<16x128xf32> to vector<8x128xf32>
    %75 = arith.addf %73, %74 : vector<8x128xf32>
    %cst_32 = arith.constant 5.000000e-01 : f32
    %76 = vector.broadcast %cst_32 : f32 to vector<8x128xf32>
    %77 = arith.mulf %75, %76 : vector<8x128xf32>
    %c0_33 = arith.constant 0 : index
    %c0_34 = arith.constant 0 : index
    %78 = vector.load %arg10[%c0_33, %c0_34] : memref<8x128xf32, #tpu.memory_space<vmem>>, vector<8x128xf32>
    tpu.vector_store %arg10[%c0_33, %c0_34], %77 {strides = array<i32>} : memref<8x128xf32, #tpu.memory_space<vmem>>, vector<8x128xf32>,
    %c0_35 = arith.constant 0 : index
    %c0_36 = arith.constant 0 : index
    %79 = vector.load %arg7[%c0_35, %c0_36] : memref<1x128xf32, #tpu.memory_space<vmem>>, vector<1x128xf32>
    %80 = vector.broadcast %79 : vector<1x128xf32> to vector<8x128xf32>
    %81 = arith.mulf %77, %80 : vector<8x128xf32>
    %cst_37 = arith.constant dense<0.000000e+00> : vector<8xf32>
    %82 = vector.multi_reduction <add>, %81, %cst_37 [1] : vector<8x128xf32> to vector<8xf32>
    %83 = vector.shape_cast %82 : vector<8xf32> to vector<8x1xf32>
    %c0_38 = arith.constant 0 : index
    %c0_39 = arith.constant 0 : index
    %84 = memref.load %arg8[%c0_38, %c0_39] : memref<1x1xf32, #tpu.memory_space<smem>>
    %85 = vector.broadcast %84 : f32 to vector<8x1xf32>
    %86 = arith.addf %83, %85 : vector<8x1xf32>
    %cst_40 = arith.constant 0.000000e+00 : f32
    %87 = vector.broadcast %cst_40 : f32 to vector<8x1xf32>
    %88 = arith.cmpf oge, %86, %87 : vector<8x1xf32>
    %cst_41 = arith.constant 0.00999999977 : f32
    %89 = vector.broadcast %cst_41 : f32 to vector<8x1xf32>
    %90 = arith.mulf %89, %86 : vector<8x1xf32>
    %91 = arith.select %88, %86, %90 : vector<8x1xi1>, vector<8x1xf32>
    %92 = vector.shape_cast %91 : vector<8x1xf32> to vector<8x1xf32>
    %93 = vector.broadcast %92 : vector<8x1xf32> to vector<8x128xf32>
    %c0_42 = arith.constant 0 : index
    %c0_43 = arith.constant 0 : index
    %94 = vector.load %arg9[%c0_42, %c0_43] : memref<8x128xf32, #tpu.memory_space<vmem>>, vector<8x128xf32>
    tpu.vector_store %arg9[%c0_42, %c0_43], %93 {strides = array<i32>} : memref<8x128xf32, #tpu.memory_space<vmem>>, vector<8x128xf32>,
    %95 = vector.shape_cast %72 : vector<1x1xf32> to vector<1x1xf32>
    %96 = vector.broadcast %95 : vector<1x1xf32> to vector<8x128xf32>
    %c0_44 = arith.constant 0 : index
    %c0_45 = arith.constant 0 : index
    %97 = vector.load %arg11[%c0_44, %c0_45] : memref<8x128xf32, #tpu.memory_space<vmem>>, vector<8x128xf32>
    tpu.vector_store %arg11[%c0_44, %c0_45], %96 {strides = array<i32>} : memref<8x128xf32, #tpu.memory_space<vmem>>, vector<8x128xf32>,
    return
  }
}

</mosaic_0001>

<bundles_post_ra>
// kernel: tpu_custom_call.1
= control target key start
LH: loop header
LB: loop body
LE: loop exit
PB: predicated region body
PF: predicated region fallthrough
CT: control target
= control target key end

     0   :  { %18 = vsyncpa [#allocation4], 0  ;;  %s1167_s0 = inlined_call_operand.hbm [shape: bf16[16,128], index: 0, kind: input, shape index: {}]   ;;  %s1168_s1 = inlined_call_operand.hbm [shape: bf16[128,128], index: 1, kind: input, shape index: {}]   ;;  %s1169_s2 = inlined_call_operand.vmem [shape: f32[1,128], index: 2, kind: input, shape index: {}]   ;;  %s1170_s3 = inlined_call_operand.hbm [shape: bf16[128,128], index: 3, kind: input, shape index: {}]   ;;  %s1171_s4 = inlined_call_operand.vmem [shape: f32[1,128], index: 4, kind: input, shape index: {}]   ;;  %s1172_s5 = inlined_call_operand.hbm [shape: bf16[128,128], index: 5, kind: input, shape index: {}]   ;;  %s1173_s6 = inlined_call_operand.vmem [shape: f32[1,128], index: 6, kind: input, shape index: {}]   ;;  %s1174_s7 = inlined_call_operand.vmem [shape: f32[1,128], index: 7, kind: input, shape index: {}]   ;;  %s1175_s8 = inlined_call_operand.<no memory space> [shape: f32[1,1], index: 8, kind: input, shape index: {}]   ;;  %s1176_s9 = inlined_call_operand.hbm [shape: f32[8,128], index: 9, kind: output, shape index: {0}]   ;;  %s1177_s10 = inlined_call_operand.hbm [shape: f32[8,128], index: 10, kind: output, shape index: {1}]   ;;  %s1178_s11 = inlined_call_operand.hbm [shape: f32[8,128], index: 11, kind: output, shape index: {2}]  }
   0x1   :  { %19 = vsyncpa [#allocation7], 0 }
   0x2   :  { %20 = vsyncpa [#allocation10], 0 }
   0x3   :  { %21 = vsyncpa [#allocation5], 0 }
   0x4   :  { %22 = vsyncpa [#allocation13], 0  ;;  %s934_s17 = smov [#allocation6]   ;;  %s935_s19 = smov [#allocation3]  }
   0x5   :  { %s40_s18 = sshll.u32 %s934_s17, 4  ;;  %s28_s20 = sshll.u32 %s935_s19, 4  ;;  %s41_s18 = int_to_ptr.vmem [resolvable:$true] %s40_s18  ;;  %s1005_s20 = int_to_ptr.vmem [resolvable:$true] %s28_s20 }
   0x6   :  { %s770_s23 = scalar_lea.hbm %s1168_s1, 1024 }
   0x7   :  { %p771_p0 = scmp.ne.s32.totalorder %s1168_s1, %s770_s23  ;;  %p774_p1 = scmp.lt.u32.totalorder %s770_s23, %s1168_s1 }
   0x9   :  { %p776_p2 = pnand %p774_p1, %p771_p0 }
   0xb   :  { %779 = shalt.err (!%p776_p2)
}
   0xc   :  { %s780_s28 = scalar_lea.vmem %s41_s18, 1024  ;;  %p785_p4 = scmp.lt.s32.totalorder %s41_s18, %s41_s18 }
   0xd   :  { %p781_p3 = scmp.ne.s32.totalorder %s41_s18, %s780_s28  ;;  %p786_p5 = scmp.lt.s32.totalorder %s780_s28, %s780_s28 }
   0xf   :  { %p787_p6 = por %p786_p5, %p785_p4 }
  0x11   :  { %p788_p7 = pnand %p787_p6, %p781_p3 }
  0x13   :  { %791 = shalt.err (!%p788_p7)
}
  0x14   :  { %s936_s29 = smov 64   ;;  %s937_s30 = smov 4  }
  0x15   :  { %46 = dma.hbm_to_vmem [thread:$0]  %s1168_s1, 1024, %s41_s18, [#allocation7], %s936_s29, %s936_s29, %s937_s30  }
  0x16   :  { %s792_s16 = scalar_lea.hbm %s1167_s0, 128 }
  0x17   :  { %p793_p8 = scmp.ne.s32.totalorder %s1167_s0, %s792_s16  ;;  %p796_p9 = scmp.lt.u32.totalorder %s792_s16, %s1167_s0 }
  0x19   :  { %p798_p10 = pnand %p796_p9, %p793_p8 }
  0x1b   :  { %801 = shalt.err (!%p798_p10)
}
  0x1c   :  { %s802_s23 = scalar_lea.vmem %s1005_s20, 128  ;;  %p807_p12 = scmp.lt.s32.totalorder %s1005_s20, %s1005_s20 }
  0x1d   :  { %p803_p11 = scmp.ne.s32.totalorder %s1005_s20, %s802_s23  ;;  %p808_p13 = scmp.lt.s32.totalorder %s802_s23, %s802_s23 }
  0x1f   :  { %p809_p0 = por %p808_p13, %p807_p12 }
  0x21   :  { %p810_p1 = pnand %p809_p0, %p803_p11 }
  0x23   :  { %813 = shalt.err (!%p810_p1)
}
  0x24   :  { %34 = dma.hbm_to_vmem [thread:$0]  %s1167_s0, 128, %s1005_s20, [#allocation4], %s936_s29, %s936_s29, %s937_s30  }
  0x25   :  { %s938_s24 = smov [#allocation8]   ;;  %s939_s26 = smov [#allocation9]  }
  0x26   :  { %s54_s25 = sshll.u32 %s938_s24, 4  ;;  %s68_s27 = sshll.u32 %s939_s26, 4  ;;  %s55_s25 = int_to_ptr.vmem [resolvable:$true] %s54_s25  ;;  %s1042_s27 = int_to_ptr.vmem [resolvable:$true] %s68_s27 }
  0x27   :  { %s814_s13 = scalar_lea.hbm %s1170_s3, 1024 }
  0x28   :  { %p815_p2 = scmp.ne.s32.totalorder %s1170_s3, %s814_s13  ;;  %p818_p3 = scmp.lt.u32.totalorder %s814_s13, %s1170_s3 }
  0x2a   :  { %p820_p4 = pnand %p818_p3, %p815_p2 }
  0x2c   :  { %823 = shalt.err (!%p820_p4)
}
  0x2d   :  { %s824_s0 = scalar_lea.vmem %s55_s25, 1024  ;;  %p829_p6 = scmp.lt.s32.totalorder %s55_s25, %s55_s25 }
  0x2e   :  { %p825_p5 = scmp.ne.s32.totalorder %s55_s25, %s824_s0  ;;  %p830_p7 = scmp.lt.s32.totalorder %s824_s0, %s824_s0 }
  0x30   :  { %p831_p8 = por %p830_p7, %p829_p6 }
  0x32   :  { %p832_p9 = pnand %p831_p8, %p825_p5 }
  0x34   :  { %835 = shalt.err (!%p832_p9)
}
  0x35   :  { %60 = dma.hbm_to_vmem [thread:$0]  %s1170_s3, 1024, %s55_s25, [#allocation7], %s936_s29, %s936_s29, %s937_s30  }
  0x36   :  { %s836_s23 = scalar_lea.hbm %s1172_s5, 1024 }
  0x37   :  { %p837_p10 = scmp.ne.s32.totalorder %s1172_s5, %s836_s23  ;;  %p840_p11 = scmp.lt.u32.totalorder %s836_s23, %s1172_s5 }
  0x39   :  { %p842_p12 = pnand %p840_p11, %p837_p10 }
  0x3b   :  { %845 = shalt.err (!%p842_p12)
}
  0x3c   :  { %s846_s28 = scalar_lea.vmem %s1042_s27, 1024  ;;  %p851_p0 = scmp.lt.s32.totalorder %s1042_s27, %s1042_s27 }
  0x3d   :  { %p847_p13 = scmp.ne.s32.totalorder %s1042_s27, %s846_s28  ;;  %p852_p1 = scmp.lt.s32.totalorder %s846_s28, %s846_s28 }
  0x3f   :  { %p853_p2 = por %p852_p1, %p851_p0 }
  0x41   :  { %p854_p3 = pnand %p853_p2, %p847_p13 }
  0x43   :  { %857 = shalt.err (!%p854_p3)
}
  0x44   :  { %74 = dma.hbm_to_vmem [thread:$0]  %s1172_s5, 1024, %s1042_s27, [#allocation10], %s936_s29, %s936_s29, %s937_s30  }
  0x45   :  { %924 = dma.done.wait [#allocation4], 128  }
  0x46   :  { %925 = vsyncadd [#allocation4], 4294967168 }
  0x47   :  { %926 = dma.done.wait [#allocation7], 2048  }
  0x48   :  { %927 = vsyncadd [#allocation7], 4294965248 }
  0x49   :  { %928 = dma.done.wait [#allocation10], 1024  }
  0x4a   :  { %929 = vsyncadd [#allocation10], 4294966272  ;;  %v940_v0 = vmov 0.0   ;;  %vm941_vm0 = vmmov 0   ;;  %v737_v1 = vld [vmem:[#allocation6] sm:$0xff]   ;;  %v738_v2 = vld [vmem:[#allocation6 + $0x8] sm:$0xff]  }
  0x4b   :  { %660 = vmatprep.subr.bf16.mxu0 %v940_v0  ;;  %676 = vmatprep.mubr.msk.bf16.mxu0 %vm941_vm0, %v940_v0  ;;  %v739_v3 = vld [vmem:[#allocation6 + $0x10] sm:$0xff]   ;;  %v746_v4 = vld [vmem:[#allocation8] sm:$0xff]   ;;  %v740_v5 = vld [vmem:[#allocation6 + $0x18] sm:$0xff]   ;;  %vm515_vm4 = vcmask 64512   ;;  %s942_s13 = smov [#allocation12]  }
  0x4c   :  { %680 = vmatprep.subr.bf16.mxu1 %v940_v0  ;;  %696 = vmatprep.mubr.msk.bf16.mxu1 %vm941_vm0, %v940_v0  ;;  %v747_v6 = vld [vmem:[#allocation8 + $0x8] sm:$0xff]   ;;  %v741_v7 = vld [vmem:[#allocation6 + $0x20] sm:$0xff]   ;;  %v748_v8 = vld [vmem:[#allocation8 + $0x10] sm:$0xff]   ;;  %s574_s14 = sshll.u32 %s942_s13, 4  ;;  %s575_s14 = int_to_ptr.vmem [resolvable:$true] %s574_s14 }
  0x4d   :  { %661 = vmatpush3.bf16.msra.mxu0 %v737_v1  ;;  %681 = vmatpush3.bf16.msra.mxu1 %v746_v4  ;;  %v742_v9 = vld [vmem:[#allocation6 + $0x28] sm:$0xff]   ;;  %v749_v10 = vld [vmem:[#allocation8 + $0x18] sm:$0xff]   ;;  %v743_v11 = vld [vmem:[#allocation6 + $0x30] sm:$0xff]   ;;  %s858_s15 = scalar_lea.vmem %s575_s14, 128  ;;  %p863_p5 = scmp.lt.s32.totalorder %s575_s14, %s575_s14 }
  0x4e   :  { %662 = vmatprep.subr.bf16.mxu0 %v940_v0  ;;  %682 = vmatprep.subr.bf16.mxu1 %v940_v0  ;;  %v750_v12 = vld [vmem:[#allocation8 + $0x20] sm:$0xff]   ;;  %v744_v13 = vld [vmem:[#allocation6 + $0x38] sm:$0xff]   ;;  %v751_v14 = vld [vmem:[#allocation8 + $0x28] sm:$0xff]   ;;  %p859_p4 = scmp.ne.s32.totalorder %s575_s14, %s858_s15  ;;  %p864_p6 = scmp.lt.s32.totalorder %s858_s15, %s858_s15 }
  0x4f   :  { %v745_v15 = vld [vmem:[#allocation3] sm:$0xff]   ;;  %v752_v16 = vld [vmem:[#allocation8 + $0x30] sm:$0xff]   ;;  %v754_v18 = vld [vmem:[#allocation9] sm:$0xff]  }
  0x50   :  { %v753_v17 = vld [vmem:[#allocation8 + $0x38] sm:$0xff]   ;;  %v755_v19 = vld [vmem:[#allocation9 + $0x8] sm:$0xff]   ;;  %v756_v20 = vld [vmem:[#allocation9 + $0x10] sm:$0xff]   ;;  %p865_p7 = por %p864_p6, %p863_p5 }
  0x51   :  { %663 = vmatpush3.bf16.msra.mxu0 %v738_v2  ;;  %683 = vmatpush3.bf16.msra.mxu1 %v747_v6  ;;  %v757_v21 = vld [vmem:[#allocation9 + $0x18] sm:$0xff]   ;;  %v758_v22 = vld [vmem:[#allocation9 + $0x20] sm:$0xff]   ;;  %v759_v23 = vld [vmem:[#allocation9 + $0x28] sm:$0xff]   ;;  %v509_v6 = vlaneseq }
  0x52   :  { %664 = vmatprep.subr.bf16.mxu0 %v940_v0  ;;  %684 = vmatprep.subr.bf16.mxu1 %v940_v0  ;;  %v602_v24 = vld [vmem:[%s1169_s2] ss:$0 sm:$0xff]  ;;  %v760_v38 = vld [vmem:[#allocation9 + $0x30] sm:$0xff]   ;;  %p866_p8 = pnand %p865_p7, %p859_p4 }
  0x53   :  { %v761_v39 = vld [vmem:[#allocation9 + $0x38] sm:$0xff]  }
  0x54   :  { %v612_v40 = vld [vmem:[%s1171_s4] ss:$0 sm:$0xff] }
  0x55   :  { %665 = vmatpush3.bf16.msra.mxu0 %v739_v3  ;;  %685 = vmatpush3.bf16.msra.mxu1 %v748_v8  ;;  %v621_v52 = vld [vmem:[%s1173_s6] ss:$0 sm:$0xff] }
  0x56   :  { %666 = vmatprep.subr.bf16.mxu0 %v940_v0  ;;  %686 = vmatprep.subr.bf16.mxu1 %v940_v0 }
  0x59   :  { %667 = vmatpush3.bf16.msra.mxu0 %v740_v5  ;;  %687 = vmatpush3.bf16.msra.mxu1 %v749_v10 }
  0x5a   :  { %668 = vmatprep.subr.bf16.mxu0 %v940_v0  ;;  %688 = vmatprep.subr.bf16.mxu1 %v940_v0 }
  0x5d   :  { %669 = vmatpush3.bf16.msra.mxu0 %v741_v7  ;;  %689 = vmatpush3.bf16.msra.mxu1 %v750_v12  ;;  %v510_v7 = vand.u32 127, %v509_v6 }
  0x5e   :  { %670 = vmatprep.subr.bf16.mxu0 %v940_v0  ;;  %690 = vmatprep.subr.bf16.mxu1 %v940_v0 }
  0x5f   :  { %vm512_vm3 = vcmp.lt.s32.totalorder %v510_v7, 8 }
  0x61   :  { %671 = vmatpush3.bf16.msra.mxu0 %v742_v9  ;;  %691 = vmatpush3.bf16.msra.mxu1 %v751_v14 }
  0x62   :  { %672 = vmatprep.subr.bf16.mxu0 %v940_v0  ;;  %692 = vmatprep.subr.bf16.mxu1 %v940_v0 }
  0x65   :  { %673 = vmatpush3.bf16.msra.mxu0 %v743_v11  ;;  %693 = vmatpush3.bf16.msra.mxu1 %v752_v16 }
  0x66   :  { %674 = vmatprep.subr.bf16.mxu0 %v940_v0  ;;  %694 = vmatprep.subr.bf16.mxu1 %v940_v0 }
  0x69   :  { %675 = vmatpush3.bf16.msra.mxu0 %v744_v13  ;;  %695 = vmatpush3.bf16.msra.mxu1 %v753_v17 }
  0x6a   :  { %700 = vmatprep.subr.bf16.mxu0 %v940_v0  ;;  %720 = vmatprep.subr.bf16.mxu1 %v940_v0 }
  0x6c   :  { %677 = vmatmul.mubr.bf16.vlgmr.msra.gmra.mrb[0].mxu0 %v745_v15 }
  0x6d   :  { %716 = vmatprep.mubr.msk.bf16.mxu0 %vm941_vm0, %v940_v0  ;;  %701 = vmatpush3.bf16.msra.mxu0 %v754_v18 }
  0x6e   :  { %702 = vmatprep.subr.bf16.mxu0 %v940_v0 }
  0x71   :  { %703 = vmatpush3.bf16.msra.mxu0 %v755_v19 }
  0x72   :  { %704 = vmatprep.subr.bf16.mxu0 %v940_v0 }
  0x75   :  { %705 = vmatpush3.bf16.msra.mxu0 %v756_v20  ;;  %v630_v20 = vld [vmem:[%s1174_s7] ss:$0 sm:$0xff] }
  0x76   :  { %706 = vmatprep.subr.bf16.mxu0 %v940_v0 }
  0x79   :  { %707 = vmatpush3.bf16.msra.mxu0 %v757_v21 }
  0x7a   :  { %708 = vmatprep.subr.bf16.mxu0 %v940_v0 }
  0x7d   :  { %709 = vmatpush3.bf16.msra.mxu0 %v758_v22 }
  0x7e   :  { %710 = vmatprep.subr.bf16.mxu0 %v940_v0 }
  0x81   :  { %711 = vmatpush3.bf16.msra.mxu0 %v759_v23 }
  0x82   :  { %712 = vmatprep.subr.bf16.mxu0 %v940_v0 }
  0x85   :  { %713 = vmatpush3.bf16.msra.mxu0 %v760_v38 }
  0x86   :  { %714 = vmatprep.subr.bf16.mxu0 %v940_v0 }
  0x89   :  { %715 = vmatpush3.bf16.msra.mxu0 %v761_v39 }
 0x13f   :  { %v207_v25 = vpop.f32.mrb[0].mxu0 }
 0x140   :  { %v208_v26 = vadd.f32 %v602_v24, %v207_v25  ;;  %v678_v27 = vpop.f32.mrb[1].mxu0 }
 0x141   :  { %v210_v28 = vpop.f32.mrb[2].mxu0 }
 0x142   :  { %v216_v29 = vmul.f32 0.01, %v208_v26  ;;  %v211_v30 = vadd.f32 %v602_v24, %v210_v28  ;;  %v679_v31 = vpop.f32.mrb[3].mxu0  ;;  %vm214_vm1 = vcmp.ge.f32.partialorder %v208_v26, 0.0 }
 0x144   :  { %vm215_vm2 = vcmp.ge.f32.partialorder %v211_v30, 0.0  ;;  %v217_v32 = vmul.f32 0.01, %v211_v30  ;;  %v218_v33 = vsel %vm214_vm1, %v208_v26, %v216_v29 }
 0x146   :  { %v219_v34 = vsel %vm215_vm2, %v211_v30, %v217_v32 }
 0x147   :  { %v220_v35 = vpack.c.bf16 %v219_v34, %v218_v33  ;;  %v537_v36 = vadd.f32 %v219_v34, %v218_v33 }
 0x149   :  { %697 = vmatmul.mubr.bf16.vlgmr.msra.gmra.mrb[0].mxu1 %v220_v35  ;;  %v1112_v37 = vmul.f32 0.5, %v537_v36 }
 0x14a   :  { %722 = vmatprep.mubr.msk.bf16.mxu1 %vm941_vm0, %v940_v0 }
 0x14b   :  { %539 = vst [vmem:[#allocation12] sm:$0xff] %v1112_v37  ;;  %v547_v21 = vmul.f32 %v630_v20, %v1112_v37 }
 0x21c   :  { %v326_v41 = vpop.f32.mrb[0].mxu1 }
 0x21d   :  { %v327_v42 = vadd.f32 %v612_v40, %v326_v41  ;;  %v698_v43 = vpop.f32.mrb[1].mxu1 }
 0x21e   :  { %v329_v44 = vpop.f32.mrb[2].mxu1 }
 0x21f   :  { %v330_v45 = vadd.f32 %v612_v40, %v329_v44  ;;  %v699_v46 = vpop.f32.mrb[3].mxu1  ;;  %v333_v47 = vmax.f32 %v327_v42, 0.0 }
 0x221   :  { %v334_v48 = vmax.f32 %v330_v45, 0.0 }
 0x223   :  { %v335_v49 = vpack.c.bf16 %v334_v48, %v333_v47 }
 0x225   :  { %717 = vmatmul.mubr.bf16.vlgmr.msra.gmra.mrb[4].mxu0 %v335_v49 }
 0x2f8   :  { %v441_v50 = vpop.f32.mrb[4].mxu0 }
 0x2f9   :  { %v718_v51 = vpop.f32.mrb[5].mxu0  ;;  %v442_v56 = vadd.f32 %v621_v52, %v441_v50 }
 0x2fa   :  { %v444_v53 = vpop.f32.mrb[6].mxu0 }
 0x2fb   :  { %v445_v54 = vadd.f32 %v621_v52, %v444_v53  ;;  %v719_v55 = vpop.f32.mrb[7].mxu0  ;;  %v448_v58 = vmul.f32 %v442_v56, %v442_v56 }
 0x2fd   :  { %v449_v57 = vmul.f32 %v445_v54, %v445_v54 }
 0x2ff   :  { %452 = vadd.xlane.f32.xlu0 %v449_v57 }
 0x303   :  { %450 = vadd.xlane.f32.xlu0 %v448_v58 }
 0x38c   :  { %v453_v59 = vpop.xlane.xlu0 %452 }
 0x38d   :  { %v455_v60 = vmax.f32 %v453_v59, 1e-24 }
 0x38f   :  { %762 = vrsqrt.f32 %v455_v60 }
 0x390   :  { %v451_v61 = vpop.xlane.xlu0 %450 }
 0x391   :  { %v454_v62 = vmax.f32 %v451_v61, 1e-24 }
 0x393   :  { %764 = vrsqrt.f32 %v454_v62 }
 0x399   :  { %v763_v63 = vpop.eup %762 }
 0x39a   :  { %v459_v0 = vmul.f32 %v763_v63, %v445_v54 }
 0x39c   :  { %v465_v1 = vpack.c.bf16 %v459_v0, %v459_v0 }
 0x39d   :  { %v765_v2 = vpop.eup %764 }
 0x39e   :  { %721 = vmatpush3.bf16.xpose.msra.mxu1 %v465_v1  ;;  %v458_v3 = vmul.f32 %v765_v2, %v442_v56 }
 0x3a0   :  { %v460_v4 = vmul.f32 %v459_v0, %v458_v3  ;;  %v464_v5 = vpack.c.bf16 %v458_v3, %v458_v3 }
 0x3a2   :  { %461 = vadd.xlane.f32.xlu0 %v460_v4 }
 0x3a5   :  { %723 = vmatmul.mubr.bf16.vlgmr.msra.gmra.mrb[4].mxu1 %v464_v5 }
 0x478   :  { %v500_v8 = vpop.f32.mrb[4].mxu1 }
 0x479   :  { %v506_v9 = vmul.f32 5.0, %v500_v8  ;;  %v724_v10 = vpop.f32.mrb[5].mxu1 }
 0x47a   :  { %v503_v11 = vpop.f32.mrb[6].mxu1 }
 0x47b   :  { %v725_v12 = vpop.f32.mrb[7].mxu1  ;;  %v514_v13 = vsel %vm512_vm3, %v506_v9, -1e+30 }
 0x47c   :  { %v516_v14 = vsel %vm515_vm4, %v514_v13, -inf }
 0x47d   :  { %517 = vmax.xlane.f32.xlu1 %v516_v14 }
 0x50a   :  { %v518_v15 = vpop.xlane.xlu1 %517 }
 0x50b   :  { %v519_v16 = vsub.f32 %v514_v13, %v518_v15 }
 0x50d   :  { %v520_v17 = vmul.f32 1.442695, %v519_v16 }
 0x50f   :  { %766 = vpow2.f32 %v520_v17 }
 0x519   :  { %v767_v18 = vpop.eup %766 }
 0x51a   :  { %v522_v19 = vsel %vm515_vm4, %v767_v18, 0.0 }
 0x51b   :  { %523 = vadd.xlane.f32.xlu1 %v522_v19 }
 0x51f   :  { %548 = vadd.xlane.f32.xlu1 %v547_v21 }
 0x520   :  { %869 = shalt.err (!%p866_p8)
}
 0x521   :  { %s870_s0 = scalar_lea.hbm %s1177_s10, 128 }
 0x522   :  { %p871_p9 = scmp.ne.s32.totalorder %s1177_s10, %s870_s0  ;;  %p874_p10 = scmp.lt.u32.totalorder %s870_s0, %s1177_s10 }
 0x524   :  { %p876_p11 = pnand %p874_p10, %p871_p9 }
 0x526   :  { %879 = shalt.err (!%p876_p11)
}
 0x527   :  { %577 = dma.vmem_to_hbm [thread:$0]  %s575_s14, 128, %s1177_s10, [#allocation13]   ;;  %v551_v23 = vstv %s1175_s8  ;;  %v462_v29 = vpop.xlane.xlu0 %461 }
 0x528   :  { %s943_s24 = smov [#allocation11]  }
 0x529   :  { %s564_s26 = sshll.u32 %s943_s24, 4  ;;  %s565_s26 = int_to_ptr.vmem [resolvable:$true] %s564_s26 }
 0x52a   :  { %s880_s28 = scalar_lea.vmem %s565_s26, 128  ;;  %p885_p13 = scmp.lt.s32.totalorder %s565_s26, %s565_s26 }
 0x52b   :  { %p881_p12 = scmp.ne.s32.totalorder %s565_s26, %s880_s28  ;;  %p886_p0 = scmp.lt.s32.totalorder %s880_s28, %s880_s28 }
 0x52d   :  { %p887_p1 = por %p886_p0, %p885_p13 }
 0x52f   :  { %p888_p2 = pnand %p887_p1, %p881_p12 }
 0x5a8   :  { %v524_v22 = vpop.xlane.xlu1 %523 }
 0x5a9   :  { %768 = vlog2.f32 %v524_v22 }
 0x5ac   :  { %v549_v24 = vpop.xlane.xlu1 %548 }
 0x5ad   :  { %v552_v25 = vadd.f32 %v551_v23, %v549_v24 }
 0x5af   :  { %v554_v26 = vmul.f32 0.01, %v552_v25  ;;  %vm553_vm5 = vcmp.ge.f32.partialorder %v552_v25, 0.0 }
 0x5b1   :  { %v555_v27 = vsel %vm553_vm5, %v552_v25, %v554_v26 }
 0x5b2   :  { %556 = vst [vmem:[#allocation11] sm:$0xff] %v555_v27 }
 0x5b3   :  { %v769_v28 = vpop.eup %768 }
 0x5b4   :  { %891 = shalt.err (!%p888_p2)
}
 0x5b5   :  { %s892_s3 = scalar_lea.hbm %s1176_s9, 128 }
 0x5b6   :  { %p893_p3 = scmp.ne.s32.totalorder %s1176_s9, %s892_s3  ;;  %p896_p4 = scmp.lt.u32.totalorder %s892_s3, %s1176_s9 }
 0x5b8   :  { %p898_p5 = pnand %p896_p4, %p893_p3 }
 0x5ba   :  { %901 = shalt.err (!%p898_p5)
}
 0x5bb   :  { %567 = dma.vmem_to_hbm [thread:$0]  %s565_s26, 128, %s1176_s9, [#allocation5]   ;;  %v526_v30 = vmul.f32 0.6931472, %v769_v28  ;;  %v463_v31 = vmul.f32 5.0, %v462_v29 }
 0x5bc   :  { %s944_s12 = smov [#allocation14]  }
 0x5bd   :  { %v527_v32 = vadd.f32 %v526_v30, %v518_v15  ;;  %s584_s4 = sshll.u32 %s944_s12, 4  ;;  %s585_s4 = int_to_ptr.vmem [resolvable:$true] %s584_s4 }
 0x5be   :  { %s902_s6 = scalar_lea.vmem %s585_s4, 128  ;;  %p907_p7 = scmp.lt.s32.totalorder %s585_s4, %s585_s4 }
 0x5bf   :  { %v528_v33 = vsub.f32 %v527_v32, %v463_v31  ;;  %p903_p6 = scmp.ne.s32.totalorder %s585_s4, %s902_s6  ;;  %p908_p8 = scmp.lt.s32.totalorder %s902_s6, %s902_s6 }
 0x5c1   :  { %v530_v34 = vrot.slane %v528_v33, 4  ;;  %p909_p9 = por %p908_p8, %p907_p7 }
 0x5c3   :  { %v531_v35 = vadd.f32 %v530_v34, %v528_v33  ;;  %p910_p10 = pnand %p909_p9, %p903_p6 }
 0x5c5   :  { %v532_v36 = vrot.slane %v531_v35, 2 }
 0x5c7   :  { %v533_v37 = vadd.f32 %v532_v36, %v531_v35 }
 0x5c9   :  { %v534_v38 = vrot.slane %v533_v37, 1 }
 0x5cb   :  { %v535_v39 = vadd.f32 %v534_v38, %v533_v37 }
 0x5cd   :  { %v536_v40 = vmul.f32 0.125, %v535_v39 }
 0x5cf   :  { %557 = vst [vmem:[#allocation14] sm:$0xff] %v536_v40 }
 0x5d0   :  { %913 = shalt.err (!%p910_p10)
}
 0x5d1   :  { %s914_s14 = scalar_lea.hbm %s1178_s11, 128 }
 0x5d2   :  { %p915_p11 = scmp.ne.s32.totalorder %s1178_s11, %s914_s14  ;;  %p918_p12 = scmp.lt.u32.totalorder %s914_s14, %s1178_s11 }
 0x5d4   :  { %p920_p13 = pnand %p918_p12, %p915_p11 }
 0x5d6   :  { %923 = shalt.err (!%p920_p13)
}
 0x5d7   :  { %587 = dma.vmem_to_hbm [thread:$0]  %s585_s4, 128, %s1178_s11, [#allocation13]  }
 0x5d8   :  { %930 = dma.done.wait [#allocation5], 128  }
 0x5d9   :  { %931 = vsyncadd [#allocation5], 4294967168 }
 0x5da   :  { %932 = dma.done.wait [#allocation13], 256  }
 0x5db   :  { %933 = vsyncadd [#allocation13], 4294967040 }
 0x5dc   :  { %597 = vsyncpa [#allocation4], 1 }
 0x5dd   :  { %598 = vsyncpa [#allocation7], 1 }
 0x5de   :  { %599 = vsyncpa [#allocation10], 1 }
 0x5df   :  { %600 = vsyncpa [#allocation5], 1 }
 0x5e0   :  { %601 = vsyncpa [#allocation13], 1 }

</bundles_post_ra>
